<compile_context>
chip_gen: v7x
topology: tpu7x:2x2x1
jax: 0.10.0
libtpu: 0.0.40
codegen_flags: <defaults>
</compile_context>

<pallas_src>
from functools import partial

import jax
import jax.numpy as jnp
from jax.experimental import pallas as pl
from jax.experimental.pallas import tpu as pltpu


def _round_up(x, m):
    return ((x + m - 1) // m) * m


def _round_down(x, m):
    return (x // m) * m


_TM_MAX = 8192                      # max rows per streamed M tile
_VMEM_BUDGET = 40 * 1024 * 1024     # stay well inside v7x's 64 MiB/TC


def _pick_tm(M, K, E, in_itemsize, out_itemsize):
    """Pick the M-tile size (multiple of 8, or == M when M is tiny)."""
    tm = min(_TM_MAX, _round_up(M, 8))
    # Keep >= 2 grid steps on the "parallel" M axis when there is enough work,
    # so both v7x TensorCores get a share.
    half = _round_up((M + 1) // 2, 8)
    tm = min(tm, max(512, half))
    # Respect the VMEM budget: double-buffered in/out tiles + resident W/bias.
    while tm > 512:
        need = (2 * tm * K * in_itemsize        # patch tile, double-buffered
                + 2 * tm * E * out_itemsize     # output tile, double-buffered
                + K * E * in_itemsize + E * 4)  # resident weight + bias
        if need <= _VMEM_BUDGET:
            break
        tm = max(_round_down(tm // 2, 8), 8)
    return tm


def _patch_embed_kernel(x_ref, w_ref, b_ref, o_ref):
    # x_ref: (tm, K) compute_dtype patch tile; w_ref: (K, E) compute_dtype;
    # b_ref: (1, E) f32.  Accumulate in f32 on the MXU, bias-add in f32,
    # cast only in the final store.
    acc = jnp.dot(x_ref[...], w_ref[...], preferred_element_type=jnp.float32)
    o_ref[...] = (acc + b_ref[...]).astype(o_ref.dtype)


@partial(jax.jit, static_argnames=("patch_size", "compute_dtype", "out_dtype"))
def patch_embed_forward(x, weight, bias, patch_size,
                        compute_dtype=jnp.bfloat16, out_dtype=jnp.bfloat16):
    """x: (B, C, H, W) NCHW, weight: (E, C, p, p), bias: (E,).

    Returns (B, num_patches, E) in out_dtype -- same values as
    proj(x).flatten(2).transpose(1, 2) in the PyTorch module.
    """
    B, C, H, W = x.shape
    E = weight.shape[0]
    p = patch_size
    assert H % p == 0 and W % p == 0, "H and W must be divisible by patch_size"
    Hp, Wp = H // p, W // p
    num_patches = Hp * Wp

    K = C * p * p
    M = B * num_patches

    # Patch extraction (single fused XLA pass inside this jit): cast first so
    # the pass reads f32 and writes compute_dtype.  Feature order (c, ph, pw)
    # matches PyTorch's conv-weight layout.  See TODO(synk) above.
    patches = x.astype(compute_dtype).reshape(B, C, Hp, p, Wp, p)
    patches = jnp.transpose(patches, (0, 2, 4, 1, 3, 5)).reshape(M, K)

    # Conv weight (E, C, p, p) -> GEMM weight (K, E); bias -> (1, E) f32.
    w_mat = weight.reshape(E, K).T.astype(compute_dtype)
    b_mat = bias.astype(jnp.float32).reshape(1, E)

    in_itemsize = jnp.dtype(compute_dtype).itemsize
    out_itemsize = jnp.dtype(out_dtype).itemsize
    tm = _pick_tm(M, K, E, in_itemsize, out_itemsize)
    # Ragged last tile: Pallas DMAs only the in-bounds rows and drops
    # out-of-bounds output writes, so no M padding / de-pad copy is needed.
    grid = (pl.cdiv(M, tm),)

    bytes_accessed = (M * K * in_itemsize       # patch stream
                      + K * E * in_itemsize     # weight (resident)
                      + E * 4                   # bias
                      + M * E * out_itemsize)   # output

    out = pl.pallas_call(
        _patch_embed_kernel,
        out_shape=jax.ShapeDtypeStruct((M, E), out_dtype),
        grid_spec=pltpu.PrefetchScalarGridSpec(
            num_scalar_prefetch=0,
            grid=grid,
            in_specs=[
                pl.BlockSpec((tm, K), lambda i: (i, 0)),   # stream M tiles
                pl.BlockSpec((K, E), lambda i: (0, 0)),    # weight resident
                pl.BlockSpec((1, E), lambda i: (0, 0)),    # bias resident
            ],
            out_specs=pl.BlockSpec((tm, E), lambda i: (i, 0)),
        ),
        compiler_params=pltpu.CompilerParams(
            dimension_semantics=("parallel",),   # shard M tiles across TCs (v7x)
            vmem_limit_bytes=_VMEM_BUDGET + 8 * 1024 * 1024,
        ),
        cost_estimate=pl.CostEstimate(
            flops=2 * M * K * E,
            transcendentals=0,
            bytes_accessed=bytes_accessed,
        ),
    )(patches, w_mat, b_mat)

    # Pure reshape -- free (no data movement), unlike the previous de-pad slice.
    return out.reshape(B, num_patches, E)


if __name__ == "__main__":
    # Small, deterministic configuration consistent with the module:
    #   img_size=16, patch_size=4, in_chan=4, embed_dim=32, batch=2
    B, C, H, W = 2, 4, 16, 16
    patch_size = 4
    embed_dim = 32

    key = jax.random.PRNGKey(0)
    kx, kw, kb = jax.random.split(key, 3)

    x = jax.random.normal(kx, (B, C, H, W), dtype=jnp.float32)
    weight = (
        jax.random.normal(kw, (embed_dim, C, patch_size, patch_size),
                          dtype=jnp.float32) * 0.02
    )
    bias = jax.random.normal(kb, (embed_dim,), dtype=jnp.float32) * 0.02

    out = patch_embed_forward(x, weight, bias, patch_size)
    out = jax.block_until_ready(out)

    # Reference in plain f32 (strided conv == patch GEMM).  Kernel uses bf16
    # inputs with f32 accumulation and a bf16 store, so tolerance is relaxed.
    ref = jax.lax.conv_general_dilated(
        x, weight,
        window_strides=(patch_size, patch_size),
        padding="VALID",
        dimension_numbers=("NCHW", "OIHW", "NCHW"),
    ) + bias[None, :, None, None]
    ref = ref.reshape(B, embed_dim, -1).transpose(0, 2, 1)

    num_patches = (H // patch_size) * (W // patch_size)
    assert out.shape == (B, num_patches, embed_dim)
    err = float(jnp.max(jnp.abs(out.astype(jnp.float32) - ref)))
    assert err < 2e-2, err

    print("KERNEL_OK")
</pallas_src>

<mosaic_0001>
module attributes {stable_mosaic.version = 11 : i64} {
  func.func @_patch_embed_kernel(%arg0: i32, %arg1: memref<32x64xbf16, #tpu.memory_space<vmem>>, %arg2: memref<64x32xbf16, #tpu.memory_space<vmem>>, %arg3: memref<1x32xf32, #tpu.memory_space<vmem>>, %arg4: memref<32x32xbf16, #tpu.memory_space<vmem>>) attributes {dimension_semantics = [#tpu.dimension_semantics<parallel>], iteration_bounds = array<i64: 1>, scalar_prefetch = 0 : i64, scratch_operands = 0 : i64, tpu.core_type = #tpu.core_type<tc>, window_params = [{transform_indices = @transform_0, window_bounds = array<i64: 32, 64>}, {pipeline_mode = #tpu.pipeline_mode<synchronous>, transform_indices = @transform_1, window_bounds = array<i64: 64, 32>}, {pipeline_mode = #tpu.pipeline_mode<synchronous>, transform_indices = @transform_2, window_bounds = array<i64: 1, 32>}, {transform_indices = @transform_3, window_bounds = array<i64: 32, 32>}]} {
    %c0 = arith.constant 0 : index
    %c0_0 = arith.constant 0 : index
    %0 = vector.load %arg1[%c0, %c0_0] : memref<32x64xbf16, #tpu.memory_space<vmem>>, vector<32x64xbf16>
    %c0_1 = arith.constant 0 : index
    %c0_2 = arith.constant 0 : index
    %1 = vector.load %arg2[%c0_1, %c0_2] : memref<64x32xbf16, #tpu.memory_space<vmem>>, vector<64x32xbf16>
    %cst = arith.constant dense<0.000000e+00> : vector<32x32xf32>
    %2 = tpu.matmul %0, %1, %cst {dimension_numbers = #tpu.dot_dimension_numbers<[1], [0], [0], [1], [0, 0, 1, 1], [], []>} : vector<32x64xbf16>, vector<64x32xbf16>, vector<32x32xf32> -> vector<32x32xf32>
    %c0_3 = arith.constant 0 : index
    %c0_4 = arith.constant 0 : index
    %3 = vector.load %arg3[%c0_3, %c0_4] : memref<1x32xf32, #tpu.memory_space<vmem>>, vector<1x32xf32>
    %4 = vector.broadcast %3 : vector<1x32xf32> to vector<32x32xf32>
    %5 = arith.addf %2, %4 : vector<32x32xf32>
    %6 = arith.truncf %5 : vector<32x32xf32> to vector<32x32xbf16>
    %c0_5 = arith.constant 0 : index
    %c0_6 = arith.constant 0 : index
    %7 = vector.load %arg4[%c0_5, %c0_6] : memref<32x32xbf16, #tpu.memory_space<vmem>>, vector<32x32xbf16>
    tpu.vector_store %arg4[%c0_5, %c0_6], %6 {strides = array<i32>} : memref<32x32xbf16, #tpu.memory_space<vmem>>, vector<32x32xbf16>,
    return
  }
  func.func @transform_0(%arg0: i32) -> (i32, i32) {
    %c0_i32 = arith.constant 0 : i32
    %c0_i32_0 = arith.constant 0 : i32
    return %arg0, %c0_i32 : i32, i32
  }
  func.func @transform_1(%arg0: i32) -> (i32, i32) {
    %c0_i32 = arith.constant 0 : i32
    %c0_i32_0 = arith.constant 0 : i32
    %c0_i32_1 = arith.constant 0 : i32
    return %c0_i32, %c0_i32_0 : i32, i32
  }
  func.func @transform_2(%arg0: i32) -> (i32, i32) {
    %c0_i32 = arith.constant 0 : i32
    %c0_i32_0 = arith.constant 0 : i32
    %c0_i32_1 = arith.constant 0 : i32
    return %c0_i32, %c0_i32_0 : i32, i32
  }
  func.func @transform_3(%arg0: i32) -> (i32, i32) {
    %c0_i32 = arith.constant 0 : i32
    %c0_i32_0 = arith.constant 0 : i32
    return %arg0, %c0_i32 : i32, i32
  }
}

</mosaic_0001>

<bundles_post_ra>
// kernel: patch_embed_forward.1
= control target key start
LH: loop header
LB: loop body
LE: loop exit
PB: predicated region body
PF: predicated region fallthrough
CT: control target
= control target key end

     0   :  { %vm69_vm0 = vcmask 523264   ;;  %s290_s0 = inlined_call_operand.vmem [shape: bf16[32,64], index: 0, kind: input, shape index: {}]   ;;  %s291_s1 = inlined_call_operand.vmem [shape: bf16[64,32], index: 1, kind: input, shape index: {}]   ;;  %s292_s2 = inlined_call_operand.vmem [shape: f32[1,32], index: 2, kind: input, shape index: {}]   ;;  %s293_s3 = inlined_call_operand.hbm [shape: bf16[32,32], index: 3, kind: output, shape index: {}]  }
   0x1   :  { %v200_v0 = vld [vmem:[%s291_s1] sm:$0xff]   ;;  %v201_v1 = vld [vmem:[%s291_s1 + $0x8] sm:$0xff]   ;;  %v202_v2 = vld [vmem:[%s291_s1 + $0x10] sm:$0xff]  }
   0x2   :  { %185 = vmatprep.subr.bf16.mxu0 %v200_v0  ;;  %v204_v3 = vld [vmem:[%s290_s0] sm:$0xff]  }
   0x3   :  { %186 = vmatpush3.bf16.msra.mxu0 %v200_v0  ;;  %193 = vmatprep.mubr.msk.bf16.mxu0 %vm69_vm0, %v204_v3 }
   0x4   :  { %187 = vmatprep.subr.bf16.mxu0 %v201_v1 }
   0x5   :  { %8 = vsyncpa [#allocation3], 0  ;;  %v203_v4 = vld [vmem:[%s291_s1 + $0x18] sm:$0xff]   ;;  %v205_v5 = vld [vmem:[%s290_s0 + $0x8] sm:$0xff]   ;;  %vm141_vm1 = vcmask 257024   ;;  %s230_s26 = smov [#allocation2]  }
   0x6   :  { %v162_v6 = vld [vmem:[%s292_s2] ss:$0 sm:$0xff]  ;;  %s151_s1 = sshll.u32 %s230_s26, 4  ;;  %s152_s1 = int_to_ptr.vmem [resolvable:$true] %s151_s1 }
   0x7   :  { %188 = vmatpush3.bf16.msra.mxu0 %v201_v1  ;;  %s206_s0 = scalar_lea.vmem %s152_s1, 256  ;;  %p211_p1 = scmp.lt.s32.totalorder %s152_s1, %s152_s1 }
   0x8   :  { %189 = vmatprep.subr.bf16.mxu0 %v202_v2  ;;  %p207_p0 = scmp.ne.s32.totalorder %s152_s1, %s206_s0  ;;  %p212_p2 = scmp.lt.s32.totalorder %s206_s0, %s206_s0 }
   0xa   :  { %p213_p3 = por %p212_p2, %p211_p1 }
   0xb   :  { %190 = vmatpush3.bf16.msra.mxu0 %v202_v2 }
   0xc   :  { %191 = vmatprep.subr.bf16.mxu0 %v203_v4  ;;  %p214_p4 = pnand %p213_p3, %p207_p0 }
   0xf   :  { %192 = vmatpush3.bf16.msra.mxu0 %v203_v4 }
  0x12   :  { %194 = vmatmul.mubr.msk.bf16.vlgmr.msra.gmra.mrb[0].mxu0 %vm69_vm0, %v205_v5 }
  0xe5   :  { %v195_v7 = vpop.f32.mrb[0].mxu0 }
  0xe6   :  { %v119_v8 = vadd.f32 %v195_v7, %v162_v6  ;;  %v110_v9 = vpop.f32.mrb[1].mxu0 }
  0xe7   :  { %v111_v10 = vadd.f32 %v162_v6, %v110_v9  ;;  %v196_v11 = vpop.f32.mrb[2].mxu0 }
  0xe8   :  { %v177_v12 = vpack.c.bf16 %v119_v8, %v119_v8  ;;  %v122_v13 = vadd.f32 %v196_v11, %v162_v6  ;;  %v113_v14 = vpop.f32.mrb[3].mxu0 }
  0xe9   :  { %v175_v15 = vpack.c.bf16 %v111_v10, %v111_v10  ;;  %v114_v16 = vadd.f32 %v162_v6, %v113_v14 }
  0xea   :  { %144 = vst.msk [vmem:[#allocation2 + $0x8] sm:$0xf] %vm141_vm1, %v177_v12  ;;  %v178_v17 = vpack.c.bf16 %v122_v13, %v122_v13 }
  0xeb   :  { %142 = vst.msk [vmem:[#allocation2] sm:$0xf] %vm141_vm1, %v175_v15  ;;  %v176_v18 = vpack.c.bf16 %v114_v16, %v114_v16 }
  0xec   :  { %145 = vst.msk [vmem:[#allocation2 + $0xc] sm:$0xf] %vm141_vm1, %v178_v17 }
  0xed   :  { %143 = vst.msk [vmem:[#allocation2 + $0x4] sm:$0xf] %vm141_vm1, %v176_v18 }
  0xee   :  { %217 = shalt.err (!%p214_p4)
}
  0xef   :  { %s218_s28 = scalar_lea.hbm %s293_s3, 256 }
  0xf0   :  { %p219_p5 = scmp.ne.s32.totalorder %s293_s3, %s218_s28  ;;  %p222_p6 = scmp.lt.u32.totalorder %s218_s28, %s293_s3 }
  0xf2   :  { %p224_p7 = pnand %p222_p6, %p219_p5 }
  0xf4   :  { %227 = shalt.err (!%p224_p7)
}
  0xf5   :  { %s231_s6 = smov 64   ;;  %s232_s7 = smov 4  }
  0xf6   :  { %157 = dma.vmem_to_hbm [thread:$0]  %s152_s1, 256, %s293_s3, [#allocation3], %s231_s6, %s231_s6, %s232_s7  }
  0xf7   :  { %228 = dma.done.wait [#allocation3], 256  }
  0xf8   :  { %229 = vsyncadd [#allocation3], 4294967040 }
  0xf9   :  { %161 = vsyncpa [#allocation3], 1 }

</bundles_post_ra>
